<compile_context>
chip_gen: v6e
topology: v6e:2x2x1
jax: 0.10.0
libtpu: 0.0.40
codegen_flags: <defaults>
</compile_context>

<pallas_src>
import math

import jax
import jax.numpy as jnp
from jax import lax
from jax.experimental import pallas as pl
from jax.experimental.pallas import tpu as pltpu

# Hyperparameters implied by the module's __init__ (small, synthetic).
D_MODEL = 32
HEAD_SIZE = 16
CTX_LENGTH = 8
DROP_OUT = 0.1  # dropout is identity at inference time (module in eval mode)


def _attention_kernel(x_ref, w_qkv_ref, o_ref):
    # x_ref:     (CB, T, D)   (whole batch when grid-less)
    # w_qkv_ref: (D, 3H)      fused [Wq | Wk | Wv]
    # o_ref:     (CB, T, H)
    cb, t, d = x_ref.shape
    h = o_ref.shape[-1]

    # Fold batch into the sublane dimension and do one fused QKV projection.
    x_flat = x_ref[...].reshape(cb * t, d)                        # (CB*T, D)
    qkv = jnp.dot(x_flat, w_qkv_ref[...],
                  preferred_element_type=jnp.float32)             # (CB*T, 3H)

    q = qkv[:, 0 * h:1 * h].reshape(cb, t, h)                     # (CB, T, H)
    k = qkv[:, 1 * h:2 * h].reshape(cb, t, h)
    v = qkv[:, 2 * h:3 * h].reshape(cb, t, h)

    # Scores: contract on the last (head) dim — no explicit transpose of K.
    scale = 1.0 / math.sqrt(h)
    scores = jnp.einsum("bqh,bkh->bqk", q, k,
                        preferred_element_type=jnp.float32) * scale  # (CB,T,T)

    # Causal (lower-triangular) mask from a single 2D (T,T) iota pair,
    # broadcast over the batch dim.  Diagonal is never masked, so the -inf
    # rows / NaN hazard does not arise.
    row = lax.broadcasted_iota(jnp.int32, (t, t), 0)
    col = lax.broadcasted_iota(jnp.int32, (t, t), 1)
    causal = (row >= col)[None, :, :]                             # (1, T, T)
    scores = jnp.where(causal, scores, -jnp.inf)

    # Numerically stable softmax along the key axis.  approx reciprocal goes
    # to the EUP slot (off the VPU critical path).
    m = jnp.max(scores, axis=-1, keepdims=True)
    e = jnp.exp(scores - m)
    denom = jnp.sum(e, axis=-1, keepdims=True)
    weights = e * pl.reciprocal(denom, approx=True)               # (CB, T, T)

    # TODO(synk): nn.Dropout is identity in eval mode; training-mode dropout
    # (pltpu.prng_random_bits-based masking) is intentionally omitted.

    o_ref[...] = jnp.einsum("bqk,bkh->bqh", weights, v,
                            preferred_element_type=jnp.float32)   # (CB, T, H)


def fuse_qkv_weights(wq, wk, wv):
    """Fuse [D,H] x3 -> [D,3H]. Call once at module init, not per forward."""
    return jnp.concatenate([wq, wk, wv], axis=1)


def attention_forward(x, w_qkv, *, num_chunks=1):
    """x: (B, T, D) f32; w_qkv: (D, 3H) f32 fused weight. Returns (B, T, H)."""
    B, T, D = x.shape
    assert T <= CTX_LENGTH and D == D_MODEL, f"Invalid input shape: {x.shape}"
    H3 = w_qkv.shape[1]
    H = H3 // 3

    # Advisory cost hint for XLA's scheduler (QKV matmul + 2 attention matmuls).
    cost = pl.CostEstimate(
        flops=2 * B * T * D * H3 + 4 * B * T * T * H,
        transcendentals=B * T * T + B * T,
        bytes_accessed=4 * (B * T * D + D * H3 + B * T * H),
    )

    if num_chunks == 1:
        # Grid-less path (default): whole arrays resident in VMEM, single DMA
        # each, no pipelining bookkeeping.  Total VMEM footprint < 20 KB.
        return pl.pallas_call(
            _attention_kernel,
            out_shape=jax.ShapeDtypeStruct((B, T, H), jnp.float32),
            in_specs=[
                pl.BlockSpec(memory_space=pltpu.MemorySpace.VMEM),
                pl.BlockSpec(memory_space=pltpu.MemorySpace.VMEM),
            ],
            out_specs=pl.BlockSpec(memory_space=pltpu.MemorySpace.VMEM),
            cost_estimate=cost,
        )(x, w_qkv)

    # Opt-in multi-chunk path (only worthwhile for large batches on
    # multi-TensorCore chips, e.g. v7x with B*T >~ 256 rows per chunk).
    assert B % num_chunks == 0
    cb = B // num_chunks
    return pl.pallas_call(
        _attention_kernel,
        out_shape=jax.ShapeDtypeStruct((B, T, H), jnp.float32),
        grid=(num_chunks,),
        in_specs=[
            pl.BlockSpec((cb, T, D), lambda c: (c, 0, 0)),    # batch chunk of x
            pl.BlockSpec((D, H3), lambda c: (0, 0)),          # fused Wqkv (resident)
        ],
        out_specs=pl.BlockSpec((cb, T, H), lambda c: (c, 0, 0)),
        compiler_params=pltpu.CompilerParams(
            dimension_semantics=("parallel",),
        ),
        cost_estimate=cost,
    )(x, w_qkv)


def _reference(x, wq, wk, wv):
    q = x @ wq
    k = x @ wk
    v = x @ wv
    s = (q @ jnp.swapaxes(k, -2, -1)) / math.sqrt(HEAD_SIZE)
    T = x.shape[1]
    mask = jnp.tril(jnp.ones((T, T), dtype=bool))
    s = jnp.where(mask, s, -jnp.inf)
    w = jax.nn.softmax(s, axis=-1)
    return w @ v


if __name__ == "__main__":
    key = jax.random.PRNGKey(0)
    kx, kq, kk, kv = jax.random.split(key, 4)

    # Deterministic weight init, matching nn.Linear's uniform(-1/sqrt(D), 1/sqrt(D)).
    bound = 1.0 / math.sqrt(D_MODEL)
    wq = jax.random.uniform(kq, (D_MODEL, HEAD_SIZE), jnp.float32, -bound, bound)
    wk = jax.random.uniform(kk, (D_MODEL, HEAD_SIZE), jnp.float32, -bound, bound)
    wv = jax.random.uniform(kv, (D_MODEL, HEAD_SIZE), jnp.float32, -bound, bound)

    # Fuse the projection weights ONCE (module-init analogue), not per forward.
    w_qkv = fuse_qkv_weights(wq, wk, wv)
    w_qkv = jax.block_until_ready(w_qkv)

    ok = True
    # (B, num_chunks): default grid-less path for B=4 and B=2, plus one run of
    # the opt-in chunked path for coverage.
    for B, chunks in ((4, 1), (2, 1), (4, 2)):
        T = CTX_LENGTH
        kx, sub = jax.random.split(kx)
        x = jax.random.normal(sub, (B, T, D_MODEL), dtype=jnp.float32)

        out = attention_forward(x, w_qkv, num_chunks=chunks)
        jax.block_until_ready(out)

        ref = _reference(x, wq, wk, wv)
        ok = ok and (out.shape == (B, T, HEAD_SIZE))
        # Tolerance relaxed vs 1e-5 because softmax uses approx EUP reciprocal.
        ok = ok and bool(jnp.allclose(out, ref, atol=2e-3, rtol=2e-3))

    assert ok, "mismatch vs reference"
    print("KERNEL_OK")
</pallas_src>

<mosaic_0001>
module attributes {stable_mosaic.version = 11 : i64} {
  func.func @_attention_kernel(%arg0: memref<4x8x32xf32, #tpu.memory_space<vmem>>, %arg1: memref<32x48xf32, #tpu.memory_space<vmem>>, %arg2: memref<4x8x16xf32, #tpu.memory_space<vmem>>) attributes {dimension_semantics = [], scalar_prefetch = 0 : i64, scratch_operands = 0 : i64, tpu.core_type = #tpu.core_type<tc>} {
    %c0 = arith.constant 0 : index
    %c0_0 = arith.constant 0 : index
    %c0_1 = arith.constant 0 : index
    %0 = vector.load %arg0[%c0, %c0_0, %c0_1] : memref<4x8x32xf32, #tpu.memory_space<vmem>>, vector<4x8x32xf32>
    %1 = vector.shape_cast %0 : vector<4x8x32xf32> to vector<32x32xf32>
    %c0_2 = arith.constant 0 : index
    %c0_3 = arith.constant 0 : index
    %2 = vector.load %arg1[%c0_2, %c0_3] : memref<32x48xf32, #tpu.memory_space<vmem>>, vector<32x48xf32>
    %cst = arith.constant dense<0.000000e+00> : vector<32x48xf32>
    %3 = tpu.matmul %1, %2, %cst {dimension_numbers = #tpu.dot_dimension_numbers<[1], [0], [0], [1], [0, 0, 1, 1], [], []>} : vector<32x32xf32>, vector<32x48xf32>, vector<32x48xf32> -> vector<32x48xf32>
    %4 = vector.extract_strided_slice %3 {offsets = [0, 0], sizes = [32, 16], strides = [1, 1]} : vector<32x48xf32> to vector<32x16xf32>
    %5 = vector.shape_cast %4 : vector<32x16xf32> to vector<4x8x16xf32>
    %6 = vector.extract_strided_slice %3 {offsets = [0, 16], sizes = [32, 16], strides = [1, 1]} : vector<32x48xf32> to vector<32x16xf32>
    %7 = vector.shape_cast %6 : vector<32x16xf32> to vector<4x8x16xf32>
    %8 = vector.extract_strided_slice %3 {offsets = [0, 32], sizes = [32, 16], strides = [1, 1]} : vector<32x48xf32> to vector<32x16xf32>
    %9 = vector.shape_cast %8 : vector<32x16xf32> to vector<4x8x16xf32>
    "tpu.trace_start"() <{level = 10 : i32, message = "bqh,bkh->bqk"}> : () -> ()
    %cst_4 = arith.constant dense<0.000000e+00> : vector<4x8x8xf32>
    %10 = tpu.matmul %5, %7, %cst_4 {dimension_numbers = #tpu.dot_dimension_numbers<[2], [2], [1], [1], [0, 0, 0, 1, 1, 1], [0], [0]>} : vector<4x8x16xf32>, vector<4x8x16xf32>, vector<4x8x8xf32> -> vector<4x8x8xf32>
    "tpu.trace_stop"() : () -> ()
    %cst_5 = arith.constant 2.500000e-01 : f32
    %11 = vector.broadcast %cst_5 : f32 to vector<4x8x8xf32>
    %12 = arith.mulf %10, %11 : vector<4x8x8xf32>
    %13 = tpu.iota {dimensions = array<i32: 0>} : vector<8x8xi32>
    %14 = tpu.iota {dimensions = array<i32: 1>} : vector<8x8xi32>
    %15 = arith.cmpi sge, %13, %14 : vector<8x8xi32>
    %16 = vector.shape_cast %15 : vector<8x8xi1> to vector<1x8x8xi1>
    %cst_6 = arith.constant 0xFF800000 : f32
    %17 = vector.shape_cast %16 : vector<1x8x8xi1> to vector<1x8x8xi1>
    %18 = vector.broadcast %17 : vector<1x8x8xi1> to vector<4x8x8xi1>
    %19 = vector.broadcast %cst_6 : f32 to vector<4x8x8xf32>
    %20 = arith.select %18, %12, %19 : vector<4x8x8xi1>, vector<4x8x8xf32>
    %cst_7 = arith.constant dense<0xFF800000> : vector<4x8xf32>
    %21 = vector.multi_reduction <maximumf>, %20, %cst_7 [2] : vector<4x8x8xf32> to vector<4x8xf32>
    %22 = vector.shape_cast %21 : vector<4x8xf32> to vector<4x8x1xf32>
    %23 = vector.broadcast %22 : vector<4x8x1xf32> to vector<4x8x8xf32>
    %24 = arith.subf %20, %23 : vector<4x8x8xf32>
    %25 = math.exp %24 : vector<4x8x8xf32>
    %cst_8 = arith.constant dense<0.000000e+00> : vector<4x8xf32>
    %26 = vector.multi_reduction <add>, %25, %cst_8 [2] : vector<4x8x8xf32> to vector<4x8xf32>
    %27 = vector.shape_cast %26 : vector<4x8xf32> to vector<4x8x1xf32>
    %28 = tpu.reciprocal %27 {approx = true} : vector<4x8x1xf32> -> vector<4x8x1xf32>
    %29 = vector.broadcast %28 : vector<4x8x1xf32> to vector<4x8x8xf32>
    %30 = arith.mulf %25, %29 : vector<4x8x8xf32>
    "tpu.trace_start"() <{level = 10 : i32, message = "bqk,bkh->bqh"}> : () -> ()
    %cst_9 = arith.constant dense<0.000000e+00> : vector<4x8x16xf32>
    %31 = tpu.matmul %30, %9, %cst_9 {dimension_numbers = #tpu.dot_dimension_numbers<[2], [1], [1], [2], [0, 0, 0, 1, 1, 2], [0], [0]>} : vector<4x8x8xf32>, vector<4x8x16xf32>, vector<4x8x16xf32> -> vector<4x8x16xf32>
    "tpu.trace_stop"() : () -> ()
    %c0_10 = arith.constant 0 : index
    %c0_11 = arith.constant 0 : index
    %c0_12 = arith.constant 0 : index
    %32 = vector.load %arg2[%c0_10, %c0_11, %c0_12] : memref<4x8x16xf32, #tpu.memory_space<vmem>>, vector<4x8x16xf32>
    tpu.vector_store %arg2[%c0_10, %c0_11, %c0_12], %31 {strides = array<i32>} : memref<4x8x16xf32, #tpu.memory_space<vmem>>, vector<4x8x16xf32>,
    return
  }
}

</mosaic_0001>

<bundles_post_ra>
// kernel: tpu_custom_call.1
= control target key start
LH: loop header
LB: loop body
LE: loop exit
PB: predicated region body
PF: predicated region fallthrough
CT: control target
= control target key end

     0   :  { %7 = vsyncpa [#allocation3], 0  ;;  %s1143_s0 = inlined_call_operand.hbm [shape: f32[4,8,32], index: 0, kind: input, shape index: {}]   ;;  %s1144_s1 = inlined_call_operand.hbm [shape: f32[32,48], index: 1, kind: input, shape index: {}]   ;;  %s1145_s2 = inlined_call_operand.hbm [shape: f32[4,8,16], index: 2, kind: output, shape index: {}]  }
   0x1   :  { %8 = vsyncpa [#allocation6], 0 }
   0x2   :  { %9 = vsyncpa [#allocation4], 0  ;;  %s1026_s9 = smov [#allocation2]  }
   0x3   :  { %s15_s10 = sshll.u32 %s1026_s9, 4  ;;  %s16_s10 = int_to_ptr.vmem [resolvable:$true] %s15_s10 }
   0x4   :  { %s968_s11 = scalar_lea.vmem %s16_s10, 512  ;;  %p973_p1 = scmp.lt.s32.totalorder %s16_s10, %s16_s10 }
   0x5   :  { %p969_p0 = scmp.ne.s32.totalorder %s16_s10, %s968_s11  ;;  %p974_p2 = scmp.lt.s32.totalorder %s968_s11, %s968_s11 }
   0x7   :  { %p975_p3 = por %p974_p2, %p973_p1 }
   0x9   :  { %p976_p4 = pnand %p975_p3, %p969_p0 }
   0xb   :  { %979 = shalt.err (!%p976_p4)
}
   0xc   :  { %s1027_s12 = smov 128   ;;  %s1028_s13 = smov 8  }
   0xd   :  { %21 = dma.hbm_to_vmem [thread:$0]  %s1143_s0, 512, %s16_s10, [#allocation3], %s1027_s12, %s1027_s12, %s1028_s13  }
   0xe   :  { %s1029_s16 = smov [#allocation5]  }
   0xf   :  { %s27_s17 = sshll.u32 %s1029_s16, 4  ;;  %s28_s17 = int_to_ptr.vmem [resolvable:$true] %s27_s17 }
  0x10   :  { %s988_s18 = scalar_lea.vmem %s28_s17, 512  ;;  %p993_p6 = scmp.lt.s32.totalorder %s28_s17, %s28_s17 }
  0x11   :  { %p989_p5 = scmp.ne.s32.totalorder %s28_s17, %s988_s18  ;;  %p994_p7 = scmp.lt.s32.totalorder %s988_s18, %s988_s18 }
  0x13   :  { %p995_p8 = por %p994_p7, %p993_p6 }
  0x15   :  { %p996_p9 = pnand %p995_p8, %p989_p5 }
  0x17   :  { %999 = shalt.err (!%p996_p9)
}
  0x18   :  { %33 = dma.hbm_to_vmem [thread:$0]  %s1144_s1, 512, %s28_s17, [#allocation6], %s1027_s12, %s1027_s12, %s1028_s13  }
  0x19   :  { %1020 = dma.done.wait [#allocation3], 512  }
  0x1a   :  { %1021 = vsyncadd [#allocation3], 4294966784 }
  0x1b   :  { %1022 = dma.done.wait [#allocation6], 512  }
  0x1c   :  { %1023 = vsyncadd [#allocation6], 4294966784  ;;  %vm48_vm0 = vcmask 261120   ;;  %v47_v0 = vld [vmem:[#allocation5 + $0x18] sm:$0xff]  ;;  %v46_v1 = vld [vmem:[#allocation5 + $0x10] sm:$0xff]  ;;  %v1030_v8 = vmov 0.0   ;;  %v459_v17 = vlaneseq }
  0x1d   :  { %881 = vmatprep.subr.mxu0 %v47_v0  ;;  %v40_v2 = vld [vmem:[#allocation2] sm:$0xff]  ;;  %v45_v3 = vld [vmem:[#allocation5 + $0x8] sm:$0xff]  ;;  %v42_v6 = vld [vmem:[#allocation2 + $0x10] sm:$0xff]  ;;  %895 = vmatprep.subr.mxu1 %v1030_v8  ;;  %vm1031_vm1 = vmmov 0   ;;  %s1032_s0 = smov 112   ;;  %vm149_vm2 = vcmask 130048  }
  0x1e   :  { %882 = vmatpush3.msra.mxu0 %v47_v0  ;;  %889 = vmatprep.mubr.msk.f32.mxu0 %vm48_vm0, %v40_v2  ;;  %v44_v4 = vld [vmem:[#allocation5] sm:$0xff]  ;;  %v41_v5 = vld [vmem:[#allocation2 + $0x8] sm:$0xff]  ;;  %v43_v7 = vld [vmem:[#allocation2 + $0x18] sm:$0xff]  ;;  %v460_v18 = vshrl.u32 %v459_v17, 7  ;;  %v462_v19 = vand.u32 127, %v459_v17  ;;  %vm470_vm4 = vcmask 64512  }
  0x1f   :  { %883 = vmatprep.subr.mxu0 %v46_v1  ;;  %897 = vmatprep.mubr.msk.f32.mxu1 %vm1031_vm1, %v1030_v8  ;;  %s1033_s1 = smov 96   ;;  %s1034_s21 = smov [#allocation7]  }
  0x20   :  { %884 = vmatpush3.msra.mxu0 %v46_v1  ;;  %vm463_vm3 = vcmp.ge.s32.totalorder %v460_v18, %v462_v19  ;;  %s828_s22 = sshll.u32 %s1034_s21, 4  ;;  %s829_s22 = int_to_ptr.vmem [resolvable:$true] %s828_s22 }
  0x21   :  { %885 = vmatprep.subr.mxu0 %v45_v3  ;;  %s1000_s23 = scalar_lea.vmem %s829_s22, 512  ;;  %p1005_p11 = scmp.lt.s32.totalorder %s829_s22, %s829_s22 }
  0x22   :  { %886 = vmatpush3.msra.mxu0 %v45_v3  ;;  %p1001_p10 = scmp.ne.s32.totalorder %s829_s22, %s1000_s23  ;;  %p1006_p12 = scmp.lt.s32.totalorder %s1000_s23, %s1000_s23 }
  0x23   :  { %887 = vmatprep.subr.mxu0 %v44_v4 }
  0x24   :  { %888 = vmatpush3.msra.mxu0 %v44_v4  ;;  %p1007_p13 = por %p1006_p12, %p1005_p11 }
  0x25   :  { %890 = vmatmul.mubr.msk.f32.vlgmr.msra.gmra.mxu0 %vm48_vm0, %v41_v5  ;;  %910 = vmatprep.subr.mxu0 %v1030_v8 }
  0x26   :  { %892 = vmatprep.mubr.msk.f32.mxu0 %vm48_vm0, %v42_v6  ;;  %p1008_p0 = pnand %p1007_p13, %p1001_p10 }
  0x29   :  { %893 = vmatmul.mubr.msk.f32.gmra.mxu0 %vm48_vm0, %v43_v7 }
  0x2a   :  { %912 = vmatprep.mubr.msk.f32.mxu0 %vm1031_vm1, %v1030_v8 }
  0xe5   :  { %v1072_v9 = vpop.f32.mrf.mxu0 }
  0xe7   :  { %v127_v10 = vpop.f32.mrf.mxu0 }
  0xe8   :  { %147 = vrot.lane.b32.xlu0 %v127_v10, %s1032_s0 }
  0xe9   :  { %v1074_v11 = vpop.f32.mrf.mxu0 }
  0xeb   :  { %v1076_v12 = vpop.f32.mrf.mxu0 }
  0xec   :  { %225 = vrot.lane.b32.xlu0 %v1072_v9, %s1032_s0  ;;  %302 = vrot.lane.b32.xlu1 %v1076_v12, %s1032_s0 }
  0xf0   :  { %379 = vrot.lane.b32.xlu1 %v1074_v11, %s1032_s0 }
 0x15a   :  { %v148_v13 = vpop.permute.xlu0 %147 }
 0x15b   :  { %896 = vmatpush3.xpose.msk.msra.mxu1 %vm149_vm2, %v148_v13 }
 0x15c   :  { %900 = vmatprep.subr.mxu1 %v1030_v8 }
 0x15e   :  { %898 = vmatmul.mubr.msk.f32.vlgmr.msra.gmra.mxu1 %vm149_vm2, %v127_v10  ;;  %v226_v14 = vpop.permute.xlu0 %225  ;;  %v303_v15 = vpop.permute.xlu1 %302 }
 0x15f   :  { %901 = vmatpush3.xpose.msk.msra.mxu1 %vm149_vm2, %v226_v14  ;;  %902 = vmatprep.mubr.msk.f32.mxu1 %vm1031_vm1, %v1030_v8 }
 0x160   :  { %905 = vmatprep.subr.mxu1 %v1030_v8 }
 0x162   :  { %903 = vmatmul.mubr.msk.f32.vlgmr.msra.gmra.mxu1 %vm149_vm2, %v1072_v9  ;;  %v380_v16 = vpop.permute.xlu1 %379 }
 0x163   :  { %906 = vmatpush3.xpose.msk.msra.mxu1 %vm149_vm2, %v303_v15  ;;  %911 = vmatpush3.xpose.msk.msra.mxu0 %vm149_vm2, %v380_v16 }
 0x164   :  { %907 = vmatprep.mubr.msk.f32.mxu1 %vm1031_vm1, %v1030_v8  ;;  %915 = vmatprep.subr.mxu1 %v1030_v8 }
 0x165   :  { %920 = vmatprep.subr.mxu0 %v1030_v8 }
 0x166   :  { %908 = vmatmul.mubr.msk.f32.vlgmr.msra.gmra.mxu1 %vm149_vm2, %v1076_v12  ;;  %913 = vmatmul.mubr.msk.f32.vlgmr.msra.gmra.mxu0 %vm149_vm2, %v1074_v11 }
 0x167   :  { %917 = vmatprep.mubr.msk.f32.mxu1 %vm1031_vm1, %v1030_v8  ;;  %922 = vmatprep.mubr.msk.f32.mxu0 %vm1031_vm1, %v1030_v8 }
 0x21e   :  { %v220_v20 = vpop.f32.mrf.mxu1 }
 0x21f   :  { %v455_v21 = vmul.f32 0.25, %v220_v20 }
 0x220   :  { %v899_v22 = vpop.f32.mrf.mxu1 }
 0x221   :  { %v466_v23 = vsel %vm463_vm3, %v455_v21, -inf }
 0x222   :  { %v297_v24 = vpop.f32.mrf.mxu1  ;;  %v471_v25 = vsel %vm470_vm4, %v466_v23, -inf }
 0x223   :  { %v456_v26 = vmul.f32 0.25, %v297_v24  ;;  %472 = vmax.xlane.f32.xlu0 %v471_v25 }
 0x224   :  { %v904_v27 = vpop.f32.mrf.mxu1 }
 0x225   :  { %v467_v28 = vsel %vm463_vm3, %v456_v26, -inf }
 0x226   :  { %v374_v29 = vpop.f32.mrf.mxu1  ;;  %v451_v30 = vpop.f32.mrf.mxu0  ;;  %v474_v31 = vsel %vm470_vm4, %v467_v28, -inf }
 0x227   :  { %v457_v32 = vmul.f32 0.25, %v374_v29  ;;  %v458_v33 = vmul.f32 0.25, %v451_v30  ;;  %475 = vmax.xlane.f32.xlu1 %v474_v31 }
 0x228   :  { %v909_v34 = vpop.f32.mrf.mxu1  ;;  %v914_v35 = vpop.f32.mrf.mxu0 }
 0x229   :  { %v468_v36 = vsel %vm463_vm3, %v457_v32, -inf  ;;  %v469_v38 = vsel %vm463_vm3, %v458_v33, -inf }
 0x22a   :  { %v477_v37 = vsel %vm470_vm4, %v468_v36, -inf  ;;  %v480_v39 = vsel %vm470_vm4, %v469_v38, -inf }
 0x22b   :  { %478 = vmax.xlane.f32.xlu0 %v477_v37 }
 0x22f   :  { %481 = vmax.xlane.f32.xlu0 %v480_v39 }
 0x238   :  { %515 = vrot.lane.b32.xlu1 %v127_v10, %s1033_s1 }
 0x2ac   :  { %v473_v40 = vpop.xlane.xlu0 %472 }
 0x2ad   :  { %v483_v41 = vsub.f32 %v466_v23, %v473_v40 }
 0x2af   :  { %v487_v42 = vmul.f32 1.442695, %v483_v41 }
 0x2b0   :  { %v476_v43 = vpop.xlane.xlu1 %475 }
 0x2b1   :  { %944 = vpow2.f32 %v487_v42  ;;  %v484_v46 = vsub.f32 %v467_v28, %v476_v43 }
 0x2b3   :  { %v489_v49 = vmul.f32 1.442695, %v484_v46 }
 0x2b4   :  { %v479_v44 = vpop.xlane.xlu0 %478  ;;  %v516_v45 = vpop.permute.xlu1 %515 }
 0x2b5   :  { %916 = vmatpush3.msra.mxu1 %v516_v45  ;;  %v485_v57 = vsub.f32 %v468_v36, %v479_v44 }
 0x2b6   :  { %925 = vmatprep.subr.mxu1 %v1030_v8 }
 0x2b7   :  { %v491_v58 = vmul.f32 1.442695, %v485_v57 }
 0x2b8   :  { %v482_v47 = vpop.xlane.xlu0 %481 }
 0x2b9   :  { %v486_v48 = vsub.f32 %v469_v38, %v482_v47 }
 0x2bb   :  { %v493_v50 = vmul.f32 1.442695, %v486_v48 }
 0x2bd   :  { %946 = vpow2.f32 %v493_v50 }
 0x2be   :  { %v945_v51 = vpop.eup %944  ;;  %948 = vpow2.f32 %v489_v49 }
 0x2bf   :  { %v495_v52 = vsel %vm470_vm4, %v945_v51, 0.0  ;;  %950 = vpow2.f32 %v491_v58 }
 0x2c0   :  { %496 = vadd.xlane.f32.xlu1 %v495_v52 }
 0x2ca   :  { %v947_v53 = vpop.eup %946 }
 0x2cb   :  { %v504_v54 = vsel %vm470_vm4, %v947_v53, 0.0  ;;  %v949_v55 = vpop.eup %948 }
 0x2cc   :  { %505 = vadd.xlane.f32.xlu0 %v504_v54  ;;  %v498_v56 = vsel %vm470_vm4, %v949_v55, 0.0  ;;  %v951_v59 = vpop.eup %950 }
 0x2cd   :  { %v501_v60 = vsel %vm470_vm4, %v951_v59, 0.0 }
 0x2d0   :  { %499 = vadd.xlane.f32.xlu0 %v498_v56 }
 0x2d1   :  { %667 = vrot.lane.b32.xlu1 %v1076_v12, %s1033_s1 }
 0x2e6   :  { %591 = vrot.lane.b32.xlu0 %v1072_v9, %s1033_s1 }
 0x2f5   :  { %502 = vadd.xlane.f32.xlu1 %v501_v60 }
 0x306   :  { %743 = vrot.lane.b32.xlu1 %v1074_v11, %s1033_s1 }
 0x349   :  { %v497_v61 = vpop.xlane.xlu1 %496 }
 0x34a   :  { %952 = vrcp.f32 %v497_v61 }
 0x34d   :  { %v668_v2 = vpop.permute.xlu1 %667 }
 0x355   :  { %v506_v62 = vpop.xlane.xlu0 %505 }
 0x357   :  { %v953_v63 = vpop.eup %952 }
 0x358   :  { %v511_v0 = vmul.f32 %v953_v63, %v945_v51 }
 0x359   :  { %v500_v1 = vpop.xlane.xlu0 %499 }
 0x35a   :  { %954 = vrcp.f32 %v500_v1  ;;  %918 = vmatmul.mubr.msk.f32.vlgmr.msra.gmra.mxu1 %vm470_vm4, %v511_v0 }
 0x35b   :  { %926 = vmatpush3.msra.mxu1 %v668_v2  ;;  %927 = vmatprep.mubr.msk.f32.mxu1 %vm1031_vm1, %v1030_v8  ;;  %956 = vrcp.f32 %v506_v62 }
 0x35d   :  { %v592_v3 = vpop.permute.xlu0 %591 }
 0x35e   :  { %921 = vmatpush3.msra.mxu0 %v592_v3 }
 0x35f   :  { %930 = vmatprep.subr.mxu0 %v1030_v8 }
 0x367   :  { %v955_v4 = vpop.eup %954 }
 0x368   :  { %v512_v5 = vmul.f32 %v955_v4, %v949_v55  ;;  %v957_v7 = vpop.eup %956 }
 0x369   :  { %v514_v10 = vmul.f32 %v957_v7, %v947_v53 }
 0x36a   :  { %923 = vmatmul.mubr.msk.f32.vlgmr.msra.gmra.mxu0 %vm470_vm4, %v512_v5 }
 0x36b   :  { %932 = vmatprep.mubr.msk.f32.mxu0 %vm1031_vm1, %v1030_v8 }
 0x37e   :  { %v503_v6 = vpop.xlane.xlu1 %502 }
 0x37f   :  { %958 = vrcp.f32 %v503_v6 }
 0x382   :  { %v744_v9 = vpop.permute.xlu1 %743 }
 0x383   :  { %931 = vmatpush3.msra.mxu0 %v744_v9 }
 0x384   :  { %933 = vmatmul.mubr.msk.f32.vlgmr.msra.gmra.mxu0 %vm470_vm4, %v514_v10 }
 0x38c   :  { %v959_v11 = vpop.eup %958 }
 0x38d   :  { %v513_v12 = vmul.f32 %v959_v11, %v951_v59 }
 0x38f   :  { %928 = vmatmul.mubr.msk.f32.vlgmr.msra.gmra.mxu1 %vm470_vm4, %v513_v12 }
 0x41a   :  { %v587_v13 = vpop.f32.mrf.mxu1 }
 0x41b   :  { %819 = vst.msk [vmem:[#allocation7] sm:$0xff] %vm149_vm2, %v587_v13 }
 0x41c   :  { %v919_v14 = vpop.f32.mrf.mxu1 }
 0x42a   :  { %v663_v15 = vpop.f32.mrf.mxu0 }
 0x42b   :  { %820 = vst.msk [vmem:[#allocation7 + $0x8] sm:$0xff] %vm149_vm2, %v663_v15 }
 0x42c   :  { %v924_v8 = vpop.f32.mrf.mxu0 }
 0x444   :  { %v815_v16 = vpop.f32.mrf.mxu0 }
 0x445   :  { %822 = vst.msk [vmem:[#allocation7 + $0x18] sm:$0xff] %vm149_vm2, %v815_v16 }
 0x446   :  { %v934_v17 = vpop.f32.mrf.mxu0 }
 0x44f   :  { %v739_v18 = vpop.f32.mrf.mxu1 }
 0x450   :  { %821 = vst.msk [vmem:[#allocation7 + $0x10] sm:$0xff] %vm149_vm2, %v739_v18 }
 0x451   :  { %v929_v19 = vpop.f32.mrf.mxu1 }
 0x452   :  { %1011 = shalt.err (!%p1008_p0)
}
 0x453   :  { %834 = dma.vmem_to_hbm [thread:$0]  %s829_s22, 512, %s1145_s2, [#allocation4], %s1027_s12, %s1027_s12, %s1028_s13  }
 0x454   :  { %1024 = dma.done.wait [#allocation4], 512  }
 0x455   :  { %1025 = vsyncadd [#allocation4], 4294966784 }
 0x456   :  { %838 = vsyncpa [#allocation3], 1 }
 0x457   :  { %839 = vsyncpa [#allocation6], 1 }
 0x458   :  { %840 = vsyncpa [#allocation4], 1 }

</bundles_post_ra>
